<compile_context>
chip_gen: v6e
topology: v6e:2x2x1
jax: 0.10.0
libtpu: 0.0.40
codegen_flags: <defaults>
</compile_context>

<pallas_src>
import jax
import jax.numpy as jnp
from jax import lax
from jax.experimental import pallas as pl
from jax.experimental.pallas import tpu as pltpu

EPS = 1e-3           # epsilon of prototype_activations
LANES = 128          # TPU lane width; trailing dims padded to this


def _round_up(x, m):
    return (x + m - 1) // m * m


# ----------------------------------------------------------------------------
# Pass 1: per-sample statistics (grid over batch, auto-pipelined feature tiles)
# ----------------------------------------------------------------------------
def stats_kernel(x_ref, w1_ref, b1_ref, w2_ref, b2_ref, pcol_ref,
                 mins_ref, zsum_ref):
    x = x_ref[0]                                        # (HW, C) bf16 tile

    # additional_layers: Conv2d(1x1) -> ReLU -> Conv2d(1x1) -> Sigmoid
    # (a 1x1 conv over NHWC features is a per-pixel matmul on the channel axis)
    h = jnp.dot(x, w1_ref[...],                         # bf16 x bf16 -> f32 MXU
                preferred_element_type=jnp.float32) + b1_ref[...]
    h = jnp.maximum(h, 0.0)                             # (HW, D) f32
    z = jnp.dot(h, w2_ref[...].astype(jnp.float32),     # keep h f32 (v5e-safe)
                preferred_element_type=jnp.float32) + b2_ref[...]
    z = jax.nn.sigmoid(z)                               # (HW, D) f32

    # conv2d(x**2, weight=ones) collapses to a row-sum: every prototype column
    # of the reference result is identical (review: drop the ones-matmul).
    s2 = jnp.sum(z * z, axis=1, keepdims=True)          # (HW, 1)
    min_s2 = jnp.min(s2, axis=0, keepdims=True)         # (1, 1) spatial min

    # partial of the batch-global torch.sum(conv2d(x, prototypes)) scalar:
    #   sum_{hw,d} z[hw,d] * colsum(protos)[d]
    # (VPU multiply + XLU reduce; replaces the degenerate (1,D)@(D,1) MXU dot)
    zp = jnp.sum(z * pcol_ref[...], axis=1, keepdims=True)   # (HW, 1)
    part = jnp.sum(zp, axis=0, keepdims=True)                # (1, 1)

    # lane-dense (1, 1, 128) stat rows -> unmasked vector stores
    mins_ref[...] = jnp.broadcast_to(min_s2.reshape(1, 1, 1), (1, 1, LANES))
    zsum_ref[...] = jnp.broadcast_to(part.reshape(1, 1, 1), (1, 1, LANES))


# ----------------------------------------------------------------------------
# Pass 2: fused epilogue (global scalar, min-distances, activations, FC)
# ----------------------------------------------------------------------------
def head_kernel(mins_ref, parts_ref, psq_ref, fcw_ref, logits_ref, mind_ref):
    min_s2 = mins_ref[:, 0:1]                                   # (N, 1)
    scalar = jnp.sum(parts_ref[:, 0:1], axis=0, keepdims=True)  # (1, 1) global S
    # min/relu commute with the constant shift, so this equals the reference's
    # per-location distances followed by the spatial min-pool (exact identity).
    min_d = jnp.maximum(min_s2 + psq_ref[...] - 2.0 * scalar, 0.0)  # (N, Ppad)
    # prototype_activations; exact divide keeps the tight tolerance.  Switch to
    # pl.reciprocal(min_d + EPS, approx=True) if ~1e-3 rel. error is acceptable.
    act = jnp.log((min_d + 1.0) / (min_d + EPS))
    logits_ref[...] = jnp.dot(act, fcw_ref[...],
                              preferred_element_type=jnp.float32)
    mind_ref[...] = min_d


# ----------------------------------------------------------------------------
# Glue: backbone stand-in + parameter prep + pallas_calls
# ----------------------------------------------------------------------------
def backbone(x_nchw, backbone_w):
    # TODO(synk): stands in for the pretrained VGG19 'features' trunk (torch.hub
    # weights can't be loaded here); deterministic 3x3 conv + ReLU + 2x2 maxpool.
    x = jnp.transpose(x_nchw, (0, 2, 3, 1))                    # NCHW -> NHWC
    y = lax.conv_general_dilated(
        x, backbone_w, window_strides=(2, 2), padding='SAME',
        dimension_numbers=('NHWC', 'HWIO', 'NHWC'))
    y = jnp.maximum(y, 0.0)
    y = lax.reduce_window(y, -jnp.inf, lax.max,
                          (1, 2, 2, 1), (1, 2, 2, 1), 'VALID')
    # bf16 feature slab: halves HBM traffic into the kernel; the matmuls still
    # accumulate in f32 (review: bf16 MXU operands on v6e/v7x).
    return y.astype(jnp.bfloat16)                              # (N, H, W, C)


def protopnet_forward(x_nchw, params):
    feat = backbone(x_nchw, params['backbone_w'])
    N, H, W, C = feat.shape
    HW = H * W
    D = params['w1'].shape[1]
    protos = params['protos']                                  # (P, D) f32
    P = protos.shape[0]
    num_classes = params['fcw_t'].shape[1]
    P_pad = _round_up(P, LANES)
    C_pad = _round_up(num_classes, LANES)

    xf = feat.reshape(N, HW, C)                                # bf16 slab

    # parameter-only derived tensors (setup-time glue)
    pcolsum = jnp.sum(protos, axis=0, keepdims=True)           # (1, D) f32
    psq = jnp.sum(protos * protos, axis=1)                     # (P,)
    psq_pad = jnp.pad(psq[None, :], ((0, 0), (0, P_pad - P)))  # (1, P_pad)
    fcw_pad = jnp.pad(params['fcw_t'],
                      ((0, P_pad - P), (0, C_pad - num_classes)))  # zero rows
                                                                   # => padding
                                                                   # is inert

    # VMEM budget: per-sample tiles here are tiny.  At real ProtoPNet scale
    # keep (x tile + h + z) x 2 buffers under ~16-24 MiB so the same code fits
    # v7x's 64 MiB (32 MiB scoped default) and v5e's smaller scoped default.
    cparams = pltpu.CompilerParams(
        dimension_semantics=("parallel",),      # batch-parallel: v7x has 2 TCs
        vmem_limit_bytes=32 * 1024 * 1024)

    mins3, parts3 = pl.pallas_call(
        stats_kernel,
        grid=(N,),
        out_shape=(jax.ShapeDtypeStruct((N, 1, LANES), jnp.float32),
                   jax.ShapeDtypeStruct((N, 1, LANES), jnp.float32)),
        in_specs=[
            pl.BlockSpec((1, HW, C), lambda n: (n, 0, 0)),     # streamed tiles
            pl.BlockSpec((C, D), lambda n: (0, 0)),            # resident params
            pl.BlockSpec((1, D), lambda n: (0, 0)),
            pl.BlockSpec((D, D), lambda n: (0, 0)),
            pl.BlockSpec((1, D), lambda n: (0, 0)),
            pl.BlockSpec((1, D), lambda n: (0, 0)),
        ],
        out_specs=(pl.BlockSpec((1, 1, LANES), lambda n: (n, 0, 0)),
                   pl.BlockSpec((1, 1, LANES), lambda n: (n, 0, 0))),
        compiler_params=cparams,
    )(xf, params['w1'], params['b1'], params['w2'], params['b2'], pcolsum)

    logits_pad, mind_pad = pl.pallas_call(
        head_kernel,
        out_shape=(jax.ShapeDtypeStruct((N, C_pad), jnp.float32),
                   jax.ShapeDtypeStruct((N, P_pad), jnp.float32)),
        in_specs=[pl.BlockSpec(memory_space=pltpu.MemorySpace.VMEM)] * 4,
        out_specs=(pl.BlockSpec(memory_space=pltpu.MemorySpace.VMEM),
                   pl.BlockSpec(memory_space=pltpu.MemorySpace.VMEM)),
        compiler_params=pltpu.CompilerParams(vmem_limit_bytes=32 * 1024 * 1024),
    )(mins3.reshape(N, LANES), parts3.reshape(N, LANES), psq_pad, fcw_pad)

    # slice the 128-lane padded slabs back to the real widths
    return logits_pad[:, :num_classes], mind_pad[:, :P]


# ----------------------------------------------------------------------------
# Pure-JAX reference (mirrors the PyTorch forward exactly, incl. the all-ones
# conv and the global torch.sum scalar) for validation
# ----------------------------------------------------------------------------
def reference_forward(x_nchw, params):
    feat = backbone(x_nchw, params['backbone_w'])
    N, H, W, C = feat.shape
    with jax.default_matmul_precision('highest'):
        xf = feat.astype(jnp.float32).reshape(N * H * W, C)
        w1 = params['w1'].astype(jnp.float32)
        w2 = params['w2'].astype(jnp.float32)
        h = jnp.maximum(xf @ w1 + params['b1'], 0.0)
        z = jax.nn.sigmoid(h @ w2 + params['b2'])
        z4 = z.reshape(N, H, W, -1)
        protos = params['protos']
        scalar = jnp.sum(jnp.einsum('nhwd,pd->nhwp', z4, protos))
        proto_sq = jnp.sum(protos ** 2, axis=1)
        x2 = jnp.einsum('nhwd,pd->nhwp', z4 ** 2, jnp.ones_like(protos))
        dist = jnp.maximum(
            x2 + (-2.0 * scalar + proto_sq)[None, None, None, :], 0.0)
        min_d = jnp.min(dist, axis=(1, 2))
        act = jnp.log((min_d + 1.0) / (min_d + EPS))
        logits = act @ params['fcw_t']
    return logits, min_d


# ----------------------------------------------------------------------------
if __name__ == "__main__":
    # small deterministic config (D=128 matches the module's default
    # output_channels, so z / the 1x1-conv weights are naturally lane-dense)
    N, C_in, S = 2, 3, 16              # input images: (2, 3, 16, 16) NCHW
    C_back = 16                        # backbone output channels
    D = 128                            # output_channels of additional_layers
    per_class, num_classes = 2, 8
    P = per_class * num_classes        # num_prototypes

    key = jax.random.PRNGKey(0)
    ks = jax.random.split(key, 5)

    params = {
        'backbone_w': (0.1 * jax.random.normal(ks[0], (3, 3, C_in, C_back))
                       ).astype(jnp.float32),
        # Kaiming-normal (fan_out, relu) 1x1 convs; weights stored in bf16
        # (MXU operands); biases / prototypes / FC stay f32.
        'w1': (jax.random.normal(ks[1], (C_back, D)) * jnp.sqrt(2.0 / D)
               ).astype(jnp.bfloat16),
        'b1': jnp.zeros((1, D), jnp.float32),
        'w2': (jax.random.normal(ks[2], (D, D)) * jnp.sqrt(2.0 / D)
               ).astype(jnp.bfloat16),
        'b2': jnp.zeros((1, D), jnp.float32),
        # prototypes ~ randn((P, D, 1, 1)) squeezed to (P, D)
        'protos': jax.random.normal(ks[3], (P, D)).astype(jnp.float32),
    }
    # fully_connected weight: +1 if the prototype belongs to the class else
    # -0.5; stored transposed (P, num_classes) so the kernel does act @ fcw_t.
    same_class = ((jnp.arange(P) // per_class)[:, None]
                  == jnp.arange(num_classes)[None, :])
    params['fcw_t'] = jnp.where(same_class, 1.0, -0.5).astype(jnp.float32)

    x = jax.random.normal(ks[4], (N, C_in, S, S)).astype(jnp.float32)

    logits, min_d = jax.jit(protopnet_forward)(x, params)
    jax.block_until_ready((logits, min_d))

    ref_logits, ref_min_d = reference_forward(x, params)
    assert logits.shape == (N, num_classes) and min_d.shape == (N, P)
    # tolerance covers f32 accumulation-order differences (MXU / in-kernel
    # reduction trees vs XLA einsums) at the O(100-1000) magnitudes involved.
    assert jnp.allclose(logits, ref_logits, rtol=1e-3, atol=1e-3), (
        float(jnp.max(jnp.abs(logits - ref_logits))))
    assert jnp.allclose(min_d, ref_min_d, rtol=1e-3, atol=1e-3), (
        float(jnp.max(jnp.abs(min_d - ref_min_d))))

    print("KERNEL_OK")
</pallas_src>

<mosaic_0001>
module attributes {stable_mosaic.version = 11 : i64} {
  func.func @head_kernel(%arg0: memref<2x128xf32, #tpu.memory_space<vmem>>, %arg1: memref<2x128xf32, #tpu.memory_space<vmem>>, %arg2: memref<1x128xf32, #tpu.memory_space<vmem>>, %arg3: memref<128x128xf32, #tpu.memory_space<vmem>>, %arg4: memref<2x128xf32, #tpu.memory_space<vmem>>, %arg5: memref<2x128xf32, #tpu.memory_space<vmem>>) attributes {dimension_semantics = [], scalar_prefetch = 0 : i64, scratch_operands = 0 : i64, tpu.core_type = #tpu.core_type<tc>} {
    %c0 = arith.constant 0 : index
    %c0_0 = arith.constant 0 : index
    %0 = vector.load %arg0[%c0, %c0_0] : memref<2x128xf32, #tpu.memory_space<vmem>>, vector<2x1xf32>
    %c0_1 = arith.constant 0 : index
    %c0_2 = arith.constant 0 : index
    %1 = vector.load %arg1[%c0_1, %c0_2] : memref<2x128xf32, #tpu.memory_space<vmem>>, vector<2x1xf32>
    %cst = arith.constant dense<0.000000e+00> : vector<1xf32>
    %2 = vector.multi_reduction <add>, %1, %cst [0] : vector<2x1xf32> to vector<1xf32>
    %3 = vector.shape_cast %2 : vector<1xf32> to vector<1x1xf32>
    %c0_3 = arith.constant 0 : index
    %c0_4 = arith.constant 0 : index
    %4 = vector.load %arg2[%c0_3, %c0_4] : memref<1x128xf32, #tpu.memory_space<vmem>>, vector<1x128xf32>
    %5 = vector.broadcast %0 : vector<2x1xf32> to vector<2x128xf32>
    %6 = vector.broadcast %4 : vector<1x128xf32> to vector<2x128xf32>
    %7 = arith.addf %5, %6 : vector<2x128xf32>
    %cst_5 = arith.constant 2.000000e+00 : f32
    %8 = vector.broadcast %cst_5 : f32 to vector<1x1xf32>
    %9 = arith.mulf %8, %3 : vector<1x1xf32>
    %10 = vector.broadcast %9 : vector<1x1xf32> to vector<2x128xf32>
    %11 = arith.subf %7, %10 : vector<2x128xf32>
    %cst_6 = arith.constant 0.000000e+00 : f32
    %12 = vector.broadcast %cst_6 : f32 to vector<2x128xf32>
    %13 = arith.maximumf %11, %12 : vector<2x128xf32>
    %cst_7 = arith.constant 1.000000e+00 : f32
    %14 = vector.broadcast %cst_7 : f32 to vector<2x128xf32>
    %15 = arith.addf %13, %14 : vector<2x128xf32>
    %cst_8 = arith.constant 1.000000e-03 : f32
    %16 = vector.broadcast %cst_8 : f32 to vector<2x128xf32>
    %17 = arith.addf %13, %16 : vector<2x128xf32>
    %18 = arith.divf %15, %17 : vector<2x128xf32>
    %19 = math.log %18 : vector<2x128xf32>
    %c0_9 = arith.constant 0 : index
    %c0_10 = arith.constant 0 : index
    %20 = vector.load %arg3[%c0_9, %c0_10] : memref<128x128xf32, #tpu.memory_space<vmem>>, vector<128x128xf32>
    %cst_11 = arith.constant dense<0.000000e+00> : vector<2x128xf32>
    %21 = tpu.matmul %19, %20, %cst_11 {dimension_numbers = #tpu.dot_dimension_numbers<[1], [0], [0], [1], [0, 0, 1, 1], [], []>} : vector<2x128xf32>, vector<128x128xf32>, vector<2x128xf32> -> vector<2x128xf32>
    %c0_12 = arith.constant 0 : index
    %c0_13 = arith.constant 0 : index
    %22 = vector.load %arg4[%c0_12, %c0_13] : memref<2x128xf32, #tpu.memory_space<vmem>>, vector<2x128xf32>
    tpu.vector_store %arg4[%c0_12, %c0_13], %21 {strides = array<i32>} : memref<2x128xf32, #tpu.memory_space<vmem>>, vector<2x128xf32>,
    %c0_14 = arith.constant 0 : index
    %c0_15 = arith.constant 0 : index
    %23 = vector.load %arg5[%c0_14, %c0_15] : memref<2x128xf32, #tpu.memory_space<vmem>>, vector<2x128xf32>
    tpu.vector_store %arg5[%c0_14, %c0_15], %13 {strides = array<i32>} : memref<2x128xf32, #tpu.memory_space<vmem>>, vector<2x128xf32>,
    return
  }
}

module attributes {stable_mosaic.version = 11 : i64} {
  func.func @stats_kernel(%arg0: i32, %arg1: memref<1x16x16xbf16, #tpu.memory_space<vmem>>, %arg2: memref<16x128xbf16, #tpu.memory_space<vmem>>, %arg3: memref<1x128xf32, #tpu.memory_space<vmem>>, %arg4: memref<128x128xbf16, #tpu.memory_space<vmem>>, %arg5: memref<1x128xf32, #tpu.memory_space<vmem>>, %arg6: memref<1x128xf32, #tpu.memory_space<vmem>>, %arg7: memref<1x1x128xf32, #tpu.memory_space<vmem>>, %arg8: memref<1x1x128xf32, #tpu.memory_space<vmem>>) attributes {dimension_semantics = [#tpu.dimension_semantics<parallel>], iteration_bounds = array<i64: 2>, scalar_prefetch = 0 : i64, scratch_operands = 0 : i64, tpu.core_type = #tpu.core_type<tc>, window_params = [{transform_indices = @transform_0, window_bounds = array<i64: 1, 16, 16>}, {pipeline_mode = #tpu.pipeline_mode<synchronous>, transform_indices = @transform_1, window_bounds = array<i64: 16, 128>}, {pipeline_mode = #tpu.pipeline_mode<synchronous>, transform_indices = @transform_2, window_bounds = array<i64: 1, 128>}, {pipeline_mode = #tpu.pipeline_mode<synchronous>, transform_indices = @transform_3, window_bounds = array<i64: 128, 128>}, {pipeline_mode = #tpu.pipeline_mode<synchronous>, transform_indices = @transform_4, window_bounds = array<i64: 1, 128>}, {pipeline_mode = #tpu.pipeline_mode<synchronous>, transform_indices = @transform_5, window_bounds = array<i64: 1, 128>}, {transform_indices = @transform_6, window_bounds = array<i64: 1, 1, 128>}, {transform_indices = @transform_7, window_bounds = array<i64: 1, 1, 128>}]} {
    %c0 = arith.constant 0 : index
    %c0_0 = arith.constant 0 : index
    %c0_1 = arith.constant 0 : index
    %0 = vector.load %arg1[%c0, %c0_0, %c0_1] : memref<1x16x16xbf16, #tpu.memory_space<vmem>>, vector<1x16x16xbf16>
    %1 = vector.shape_cast %0 : vector<1x16x16xbf16> to vector<16x16xbf16>
    %c0_2 = arith.constant 0 : index
    %c0_3 = arith.constant 0 : index
    %2 = vector.load %arg2[%c0_2, %c0_3] : memref<16x128xbf16, #tpu.memory_space<vmem>>, vector<16x128xbf16>
    %cst = arith.constant dense<0.000000e+00> : vector<16x128xf32>
    %3 = tpu.matmul %1, %2, %cst {dimension_numbers = #tpu.dot_dimension_numbers<[1], [0], [0], [1], [0, 0, 1, 1], [], []>} : vector<16x16xbf16>, vector<16x128xbf16>, vector<16x128xf32> -> vector<16x128xf32>
    %c0_4 = arith.constant 0 : index
    %c0_5 = arith.constant 0 : index
    %4 = vector.load %arg3[%c0_4, %c0_5] : memref<1x128xf32, #tpu.memory_space<vmem>>, vector<1x128xf32>
    %5 = vector.broadcast %4 : vector<1x128xf32> to vector<16x128xf32>
    %6 = arith.addf %3, %5 : vector<16x128xf32>
    %cst_6 = arith.constant 0.000000e+00 : f32
    %7 = vector.broadcast %cst_6 : f32 to vector<16x128xf32>
    %8 = arith.maximumf %6, %7 : vector<16x128xf32>
    %c0_7 = arith.constant 0 : index
    %c0_8 = arith.constant 0 : index
    %9 = vector.load %arg4[%c0_7, %c0_8] : memref<128x128xbf16, #tpu.memory_space<vmem>>, vector<128x128xbf16>
    %10 = arith.extf %9 : vector<128x128xbf16> to vector<128x128xf32>
    %cst_9 = arith.constant dense<0.000000e+00> : vector<16x128xf32>
    %11 = tpu.matmul %8, %10, %cst_9 {dimension_numbers = #tpu.dot_dimension_numbers<[1], [0], [0], [1], [0, 0, 1, 1], [], []>} : vector<16x128xf32>, vector<128x128xf32>, vector<16x128xf32> -> vector<16x128xf32>
    %c0_10 = arith.constant 0 : index
    %c0_11 = arith.constant 0 : index
    %12 = vector.load %arg5[%c0_10, %c0_11] : memref<1x128xf32, #tpu.memory_space<vmem>>, vector<1x128xf32>
    %13 = vector.broadcast %12 : vector<1x128xf32> to vector<16x128xf32>
    %14 = arith.addf %11, %13 : vector<16x128xf32>
    %15 = arith.negf %14 : vector<16x128xf32>
    %16 = math.exp %15 : vector<16x128xf32>
    %cst_12 = arith.constant 1.000000e+00 : f32
    %17 = vector.broadcast %cst_12 : f32 to vector<16x128xf32>
    %18 = arith.addf %17, %16 : vector<16x128xf32>
    %19 = arith.divf %17, %18 : vector<16x128xf32>
    %20 = arith.mulf %19, %19 : vector<16x128xf32>
    %cst_13 = arith.constant dense<0.000000e+00> : vector<16xf32>
    %21 = vector.multi_reduction <add>, %20, %cst_13 [1] : vector<16x128xf32> to vector<16xf32>
    %22 = vector.shape_cast %21 : vector<16xf32> to vector<16x1xf32>
    %cst_14 = arith.constant dense<0x7F800000> : vector<1xf32>
    %23 = vector.multi_reduction <minimumf>, %22, %cst_14 [0] : vector<16x1xf32> to vector<1xf32>
    %24 = vector.shape_cast %23 : vector<1xf32> to vector<1x1xf32>
    %c0_15 = arith.constant 0 : index
    %c0_16 = arith.constant 0 : index
    %25 = vector.load %arg6[%c0_15, %c0_16] : memref<1x128xf32, #tpu.memory_space<vmem>>, vector<1x128xf32>
    %26 = vector.broadcast %25 : vector<1x128xf32> to vector<16x128xf32>
    %27 = arith.mulf %19, %26 : vector<16x128xf32>
    %cst_17 = arith.constant dense<0.000000e+00> : vector<16xf32>
    %28 = vector.multi_reduction <add>, %27, %cst_17 [1] : vector<16x128xf32> to vector<16xf32>
    %29 = vector.shape_cast %28 : vector<16xf32> to vector<16x1xf32>
    %cst_18 = arith.constant dense<0.000000e+00> : vector<1xf32>
    %30 = vector.multi_reduction <add>, %29, %cst_18 [0] : vector<16x1xf32> to vector<1xf32>
    %31 = vector.shape_cast %30 : vector<1xf32> to vector<1x1xf32>
    %32 = vector.shape_cast %24 : vector<1x1xf32> to vector<1x1x1xf32>
    %33 = vector.shape_cast %32 : vector<1x1x1xf32> to vector<1x1x1xf32>
    %34 = vector.broadcast %33 : vector<1x1x1xf32> to vector<1x1x128xf32>
    %c0_19 = arith.constant 0 : index
    %c0_20 = arith.constant 0 : index
    %c0_21 = arith.constant 0 : index
    %35 = vector.load %arg7[%c0_19, %c0_20, %c0_21] : memref<1x1x128xf32, #tpu.memory_space<vmem>>, vector<1x1x128xf32>
    tpu.vector_store %arg7[%c0_19, %c0_20, %c0_21], %34 {strides = array<i32>} : memref<1x1x128xf32, #tpu.memory_space<vmem>>, vector<1x1x128xf32>,
    %36 = vector.shape_cast %31 : vector<1x1xf32> to vector<1x1x1xf32>
    %37 = vector.shape_cast %36 : vector<1x1x1xf32> to vector<1x1x1xf32>
    %38 = vector.broadcast %37 : vector<1x1x1xf32> to vector<1x1x128xf32>
    %c0_22 = arith.constant 0 : index
    %c0_23 = arith.constant 0 : index
    %c0_24 = arith.constant 0 : index
    %39 = vector.load %arg8[%c0_22, %c0_23, %c0_24] : memref<1x1x128xf32, #tpu.memory_space<vmem>>, vector<1x1x128xf32>
    tpu.vector_store %arg8[%c0_22, %c0_23, %c0_24], %38 {strides = array<i32>} : memref<1x1x128xf32, #tpu.memory_space<vmem>>, vector<1x1x128xf32>,
    return
  }
  func.func @transform_0(%arg0: i32) -> (i32, i32, i32) {
    %c0_i32 = arith.constant 0 : i32
    %c0_i32_0 = arith.constant 0 : i32
    %c0_i32_1 = arith.constant 0 : i32
    return %arg0, %c0_i32, %c0_i32_0 : i32, i32, i32
  }
  func.func @transform_1(%arg0: i32) -> (i32, i32) {
    %c0_i32 = arith.constant 0 : i32
    %c0_i32_0 = arith.constant 0 : i32
    %c0_i32_1 = arith.constant 0 : i32
    return %c0_i32, %c0_i32_0 : i32, i32
  }
  func.func @transform_2(%arg0: i32) -> (i32, i32) {
    %c0_i32 = arith.constant 0 : i32
    %c0_i32_0 = arith.constant 0 : i32
    %c0_i32_1 = arith.constant 0 : i32
    return %c0_i32, %c0_i32_0 : i32, i32
  }
  func.func @transform_3(%arg0: i32) -> (i32, i32) {
    %c0_i32 = arith.constant 0 : i32
    %c0_i32_0 = arith.constant 0 : i32
    %c0_i32_1 = arith.constant 0 : i32
    return %c0_i32, %c0_i32_0 : i32, i32
  }
  func.func @transform_4(%arg0: i32) -> (i32, i32) {
    %c0_i32 = arith.constant 0 : i32
    %c0_i32_0 = arith.constant 0 : i32
    %c0_i32_1 = arith.constant 0 : i32
    return %c0_i32, %c0_i32_0 : i32, i32
  }
  func.func @transform_5(%arg0: i32) -> (i32, i32) {
    %c0_i32 = arith.constant 0 : i32
    %c0_i32_0 = arith.constant 0 : i32
    %c0_i32_1 = arith.constant 0 : i32
    return %c0_i32, %c0_i32_0 : i32, i32
  }
  func.func @transform_6(%arg0: i32) -> (i32, i32, i32) {
    %c0_i32 = arith.constant 0 : i32
    %c0_i32_0 = arith.constant 0 : i32
    %c0_i32_1 = arith.constant 0 : i32
    return %arg0, %c0_i32, %c0_i32_0 : i32, i32, i32
  }
  func.func @transform_7(%arg0: i32) -> (i32, i32, i32) {
    %c0_i32 = arith.constant 0 : i32
    %c0_i32_0 = arith.constant 0 : i32
    %c0_i32_1 = arith.constant 0 : i32
    return %arg0, %c0_i32, %c0_i32_0 : i32, i32, i32
  }
}

</mosaic_0001>

<bundles_post_ra>
// kernel: protopnet_forward.3
= control target key start
LH: loop header
LB: loop body
LE: loop exit
PB: predicated region body
PF: predicated region fallthrough
CT: control target
= control target key end

     0   :  { %11 = vsyncpa [#allocation3], 0  ;;  %vm23_vm0 = vcmask 1024   ;;  %v281_v2 = vmov 0   ;;  %s379_s0 = inlined_call_operand.vmem [shape: f32[2,128], index: 0, kind: input, shape index: {}]   ;;  %s380_s1 = inlined_call_operand.vmem [shape: f32[2,128], index: 1, kind: input, shape index: {}]   ;;  %s381_s2 = inlined_call_operand.vmem [shape: f32[1,128], index: 2, kind: input, shape index: {}]   ;;  %s382_s3 = inlined_call_operand.vmem [shape: f32[128,128], index: 3, kind: input, shape index: {}]   ;;  %s383_s4 = inlined_call_operand.hbm [shape: f32[2,128], index: 4, kind: output, shape index: {0}]   ;;  %s384_s5 = inlined_call_operand.hbm [shape: f32[2,128], index: 5, kind: output, shape index: {1}]  }
   0x1   :  { %v21_v0 = vld [vmem:[%s379_s0] sm:$0x3]  ;;  %232 = vset.pattern.permute.xlu0 %v281_v2 }
   0x2   :  { %v22_v1 = vld [vmem:[%s380_s1] sm:$0x3] }
   0x3   :  { %v24_v3 = vsel %vm23_vm0, %v22_v1, 0.0 }
   0x4   :  { %12 = vsyncpa [#allocation5], 0  ;;  %34 = vperm.xlu0 %232, %v21_v0   ;;  %v25_v4 = vrot.slane %v24_v3, 4  ;;  %v282_v11 = vmov 0.0   ;;  %v73_v12 = vld [vmem:[%s382_s3 + $0x78] sm:$0xff]  ;;  %v72_v13 = vld [vmem:[%s382_s3 + $0x70] sm:$0xff] }
   0x5   :  { %192 = vmatprep.subr.mxu0 %v282_v11  ;;  %v71_v14 = vld [vmem:[%s382_s3 + $0x68] sm:$0xff]  ;;  %v70_v15 = vld [vmem:[%s382_s3 + $0x60] sm:$0xff]  ;;  %v69_v16 = vld [vmem:[%s382_s3 + $0x58] sm:$0xff]  ;;  %vm283_vm1 = vmmov 0  }
   0x6   :  { %v26_v5 = vadd.f32 %v25_v4, %v24_v3  ;;  %193 = vmatpush3.msra.mxu0 %v73_v12  ;;  %v68_v17 = vld [vmem:[%s382_s3 + $0x50] sm:$0xff]  ;;  %v67_v18 = vld [vmem:[%s382_s3 + $0x48] sm:$0xff]  ;;  %v66_v19 = vld [vmem:[%s382_s3 + $0x40] sm:$0xff]  ;;  %224 = vmatprep.mubr.msk.f32.mxu0 %vm283_vm1, %v282_v11 }
   0x7   :  { %194 = vmatprep.subr.mxu0 %v282_v11  ;;  %v65_v20 = vld [vmem:[%s382_s3 + $0x38] sm:$0xff]  ;;  %v64_v21 = vld [vmem:[%s382_s3 + $0x30] sm:$0xff]  ;;  %v63_v22 = vld [vmem:[%s382_s3 + $0x28] sm:$0xff] }
   0x8   :  { %v27_v6 = vrot.slane %v26_v5, 2  ;;  %195 = vmatpush3.msra.mxu0 %v72_v13  ;;  %v62_v23 = vld [vmem:[%s382_s3 + $0x20] sm:$0xff]  ;;  %v61_v24 = vld [vmem:[%s382_s3 + $0x18] sm:$0xff]  ;;  %v60_v25 = vld [vmem:[%s382_s3 + $0x10] sm:$0xff] }
   0x9   :  { %196 = vmatprep.subr.mxu0 %v282_v11  ;;  %v59_v26 = vld [vmem:[%s382_s3 + $0x8] sm:$0xff]  ;;  %v58_v27 = vld [vmem:[%s382_s3] sm:$0xff]  ;;  %s284_s3 = smov [#allocation4]  }
   0xa   :  { %v28_v7 = vadd.f32 %v27_v6, %v26_v5  ;;  %197 = vmatpush3.msra.mxu0 %v71_v14  ;;  %v174_v29 = vld [vmem:[%s381_s2] ss:$0 sm:$0xff]  ;;  %s162_s27 = sshll.u32 %s284_s3, 4  ;;  %s163_s27 = int_to_ptr.vmem [resolvable:$true] %s162_s27 }
   0xb   :  { %198 = vmatprep.subr.mxu0 %v282_v11  ;;  %s237_s28 = scalar_lea.vmem %s163_s27, 32  ;;  %p242_p1 = scmp.lt.s32.totalorder %s163_s27, %s163_s27 }
   0xc   :  { %v29_v8 = vrot.slane %v28_v7, 1  ;;  %199 = vmatpush3.msra.mxu0 %v70_v15  ;;  %p238_p0 = scmp.ne.s32.totalorder %s163_s27, %s237_s28  ;;  %p243_p2 = scmp.lt.s32.totalorder %s237_s28, %s237_s28 }
   0xd   :  { %200 = vmatprep.subr.mxu0 %v282_v11 }
   0xe   :  { %v30_v9 = vadd.f32 %v29_v8, %v28_v7  ;;  %201 = vmatpush3.msra.mxu0 %v69_v16  ;;  %p244_p3 = por %p243_p2, %p242_p1 }
   0xf   :  { %202 = vmatprep.subr.mxu0 %v282_v11 }
  0x10   :  { %v44_v10 = vmul.f32 2.0, %v30_v9  ;;  %203 = vmatpush3.msra.mxu0 %v68_v17  ;;  %p245_p4 = pnand %p244_p3, %p238_p0 }
  0x11   :  { %204 = vmatprep.subr.mxu0 %v282_v11 }
  0x12   :  { %47 = vperm.xlu0 %232, %v44_v10   ;;  %205 = vmatpush3.msra.mxu0 %v67_v18 }
  0x13   :  { %206 = vmatprep.subr.mxu0 %v282_v11 }
  0x14   :  { %207 = vmatpush3.msra.mxu0 %v66_v19 }
  0x15   :  { %208 = vmatprep.subr.mxu0 %v282_v11 }
  0x16   :  { %209 = vmatpush3.msra.mxu0 %v65_v20 }
  0x17   :  { %210 = vmatprep.subr.mxu0 %v282_v11 }
  0x18   :  { %211 = vmatpush3.msra.mxu0 %v64_v21 }
  0x19   :  { %212 = vmatprep.subr.mxu0 %v282_v11 }
  0x1a   :  { %213 = vmatpush3.msra.mxu0 %v63_v22 }
  0x1b   :  { %214 = vmatprep.subr.mxu0 %v282_v11 }
  0x1c   :  { %215 = vmatpush3.msra.mxu0 %v62_v23 }
  0x1d   :  { %216 = vmatprep.subr.mxu0 %v282_v11 }
  0x1e   :  { %217 = vmatpush3.msra.mxu0 %v61_v24 }
  0x1f   :  { %218 = vmatprep.subr.mxu0 %v282_v11 }
  0x20   :  { %219 = vmatpush3.msra.mxu0 %v60_v25 }
  0x21   :  { %220 = vmatprep.subr.mxu0 %v282_v11 }
  0x22   :  { %221 = vmatpush3.msra.mxu0 %v59_v26 }
  0x23   :  { %222 = vmatprep.subr.mxu0 %v282_v11 }
  0x24   :  { %223 = vmatpush3.msra.mxu0 %v58_v27 }
  0x7f   :  { %v35_v28 = vpop.permute.xlu0 %34 }
  0x80   :  { %v43_v30 = vadd.f32 %v174_v29, %v35_v28 }
  0x8d   :  { %v48_v31 = vpop.permute.xlu0 %47 }
  0x8e   :  { %v50_v32 = vsub.f32 %v43_v30, %v48_v31 }
  0x90   :  { %v51_v33 = vmax.f32 %v50_v32, 0.0 }
  0x92   :  { %v53_v34 = vadd.f32 0.001, %v51_v33  ;;  %145 = vst [vmem:[#allocation4] sm:$0x3] %v51_v33  ;;  %v52_v35 = vadd.f32 1.0, %v51_v33 }
  0x94   :  { %233 = vrcp.f32 %v53_v34 }
  0xa1   :  { %v234_v36 = vpop.eup %233 }
  0xa2   :  { %v55_v37 = vmul.f32 %v234_v36, %v52_v35 }
  0xa4   :  { %235 = vlog2.f32 %v55_v37 }
  0xb1   :  { %v236_v38 = vpop.eup %235 }
  0xb2   :  { %v57_v39 = vmul.f32 0.6931472, %v236_v38 }
  0xb4   :  { %225 = vmatmul.mubr.f32.vlgmr.msra.gmra.mxu0 %v57_v39 }
  0xb5   :  { %248 = shalt.err (!%p245_p4)
}
  0xb6   :  { %165 = dma.vmem_to_hbm [thread:$0]  %s163_s27, 32, %s384_s5, [#allocation5]  }
  0xb7   :  { %s285_s30 = smov [#allocation2]  }
  0xb8   :  { %s152_s6 = sshll.u32 %s285_s30, 4  ;;  %s153_s6 = int_to_ptr.vmem [resolvable:$true] %s152_s6 }
  0xb9   :  { %s257_s7 = scalar_lea.vmem %s153_s6, 32  ;;  %p262_p6 = scmp.lt.s32.totalorder %s153_s6, %s153_s6 }
  0xba   :  { %p258_p5 = scmp.ne.s32.totalorder %s153_s6, %s257_s7  ;;  %p263_p7 = scmp.lt.s32.totalorder %s257_s7, %s257_s7 }
  0xbc   :  { %p264_p8 = por %p263_p7, %p262_p6 }
  0xbe   :  { %p265_p9 = pnand %p264_p8, %p258_p5 }
 0x174   :  { %v140_v40 = vpop.f32.mrf.mxu0 }
 0x175   :  { %144 = vst [vmem:[#allocation2] sm:$0x3] %v140_v40 }
 0x176   :  { %v226_v41 = vpop.f32.mrf.mxu0 }
 0x177   :  { %268 = shalt.err (!%p265_p9)
}
 0x178   :  { %155 = dma.vmem_to_hbm [thread:$0]  %s153_s6, 32, %s383_s4, [#allocation3]  }
 0x179   :  { %277 = dma.done.wait [#allocation3], 32  }
 0x17a   :  { %278 = vsyncadd [#allocation3], 4294967264 }
 0x17b   :  { %279 = dma.done.wait [#allocation5], 32  }
 0x17c   :  { %280 = vsyncadd [#allocation5], 4294967264 }
 0x17d   :  { %172 = vsyncpa [#allocation3], 1 }
 0x17e   :  { %173 = vsyncpa [#allocation5], 1 }

// kernel: protopnet_forward.2
= control target key start
LH: loop header
LB: loop body
LE: loop exit
PB: predicated region body
PF: predicated region fallthrough
CT: control target
= control target key end

     0   :  { %s775_s24 = smov 0   ;;  %s836_s0 = inlined_call_operand.vmem [shape: bf16[2,16,16], index: 0, kind: input, shape index: {}]   ;;  %s837_s1 = inlined_call_operand.vmem [shape: bf16[16,128], index: 1, kind: input, shape index: {}]   ;;  %s838_s2 = inlined_call_operand.vmem [shape: f32[1,128], index: 2, kind: input, shape index: {}]   ;;  %s839_s3 = inlined_call_operand.vmem [shape: bf16[128,128], index: 3, kind: input, shape index: {}]   ;;  %s840_s4 = inlined_call_operand.vmem [shape: f32[1,128], index: 4, kind: input, shape index: {}]   ;;  %s841_s5 = inlined_call_operand.vmem [shape: f32[1,128], index: 5, kind: input, shape index: {}]   ;;  %s842_s6 = inlined_call_operand.vmem [shape: f32[2,1,128], index: 6, kind: output, shape index: {0}]   ;;  %s843_s7 = inlined_call_operand.vmem [shape: f32[2,1,128], index: 7, kind: output, shape index: {1}]  }
   0x1 LB: > { %s587_s25 = sadd.s32 4294967295, %s731_s24   ;;  %p591_p0 = scmp.ge.s32.totalorder %s731_s24, 1  ;;  %s731_s24 = sphi %s775_s24, %s18_s24  }
   0x2   : > { %p240_p1 = scmp.lt.s32.totalorder %s731_s24, 3 }
   0x4   : > { %p241_p2 = pnand %p591_p0, %p240_p1 }
   0x5   : > { %p273_p3 = scmp.lt.s32.totalorder (!%p241_p2), %s587_s25, 1 }
   0x6   : > { %244 = sbr.rel (%p241_p2) target bundleno = 605 (0x25d), region = 44 }
   0xb   : > { %v715_v0 = vld [vmem:[%s837_s1] sm:$0xff]   ;;  %v733_v1 = vmov 0.0   ;;  %v643_v2 = vld [vmem:[%s839_s3 + $0x38] sm:$0xff]   ;;  %v642_v3 = vld [vmem:[%s839_s3 + $0x30] sm:$0xff]   ;;  %vm734_vm0 = vmmov 0   ;;  %s845_s25 = smov (!%p273_p3, %s587_s25), 1 }
   0xc   : > { %664 = vmatprep.subr.bf16.mxu0 %v733_v1  ;;  %666 = vmatprep.mubr.msk.bf16.mxu0 %vm734_vm0, %v733_v1  ;;  %v635_v4 = vunpack.c.l.bf16 %v643_v2  ;;  %v636_v5 = vunpack.c.h.bf16 %v643_v2  ;;  %v632_v6 = vunpack.c.h.bf16 %v642_v3  ;;  %s604_s9 = sshll.u32 %s845_s25, 3  ;;  %v641_v7 = vld [vmem:[%s839_s3 + $0x28] sm:$0xff]   ;;  %vm307_vm1 = vcmask 130048   ;;  %v640_v11 = vld [vmem:[%s839_s3 + $0x20] sm:$0xff]   ;;  %v639_v14 = vld [vmem:[%s839_s3 + $0x18] sm:$0xff]   ;;  %s283_s12 = scalar_lea.vmem %s843_s7, %s845_s25 }
   0xd   : > { %665 = vmatpush3.bf16.msra.mxu0 %v715_v0  ;;  %s277_s14 = scalar_lea.vmem %s836_s0, %s604_s9  ;;  %v631_v8 = vunpack.c.l.bf16 %v642_v3  ;;  %v628_v10 = vunpack.c.h.bf16 %v641_v7  ;;  %v627_v12 = vunpack.c.l.bf16 %v641_v7  ;;  %v624_v13 = vunpack.c.h.bf16 %v640_v11  ;;  %v638_v17 = vld [vmem:[%s839_s3 + $0x10] sm:$0xff]   ;;  %v637_v21 = vld [vmem:[%s839_s3 + $0x8] sm:$0xff]   ;;  %v606_v24 = vld [vmem:[%s839_s3] sm:$0xff]   ;;  %s280_s15 = scalar_lea.vmem %s842_s6, %s845_s25 }
   0xe   : > { %670 = vmatprep.subr.mxu1 %v636_v5  ;;  %v716_v9 = vld [vmem:[%s277_s14] sm:$0xff]   ;;  %v623_v15 = vunpack.c.l.bf16 %v640_v11  ;;  %v620_v16 = vunpack.c.h.bf16 %v639_v14  ;;  %v619_v18 = vunpack.c.l.bf16 %v639_v14  ;;  %v616_v19 = vunpack.c.h.bf16 %v638_v17 }
   0xf   : > { %671 = vmatpush3.msra.mxu1 %v636_v5  ;;  %v615_v20 = vunpack.c.l.bf16 %v638_v17  ;;  %v612_v22 = vunpack.c.h.bf16 %v637_v21  ;;  %v611_v23 = vunpack.c.l.bf16 %v637_v21  ;;  %v608_v25 = vunpack.c.h.bf16 %v606_v24  ;;  %v594_v27 = vld [vmem:[%s838_s2] ss:$0 sm:$0xff] }
  0x10   : > { %672 = vmatprep.subr.mxu1 %v635_v4  ;;  %667 = vmatmul.mubr.msk.bf16.vlgmr.msra.gmra.mxu0 %vm307_vm1, %v716_v9  ;;  %v607_v26 = vunpack.c.l.bf16 %v606_v24  ;;  %v598_v36 = vld [vmem:[%s840_s4] ss:$0 sm:$0xff] }
  0x11   : > { %673 = vmatpush3.msra.mxu1 %v635_v4  ;;  %v601_v48 = vld [vmem:[%s841_s5] ss:$0 sm:$0xff] }
  0x12   : > { %674 = vmatprep.subr.mxu1 %v632_v6 }
  0x13   : > { %675 = vmatpush3.msra.mxu1 %v632_v6 }
  0x14   : > { %676 = vmatprep.subr.mxu1 %v631_v8 }
  0x15   : > { %677 = vmatpush3.msra.mxu1 %v631_v8 }
  0x16   : > { %678 = vmatprep.subr.mxu1 %v628_v10 }
  0x17   : > { %679 = vmatpush3.msra.mxu1 %v628_v10 }
  0x18   : > { %680 = vmatprep.subr.mxu1 %v627_v12 }
  0x19   : > { %681 = vmatpush3.msra.mxu1 %v627_v12 }
  0x1a   : > { %682 = vmatprep.subr.mxu1 %v624_v13 }
  0x1b   : > { %683 = vmatpush3.msra.mxu1 %v624_v13 }
  0x1c   : > { %684 = vmatprep.subr.mxu1 %v623_v15 }
  0x1d   : > { %685 = vmatpush3.msra.mxu1 %v623_v15 }
  0x1e   : > { %686 = vmatprep.subr.mxu1 %v620_v16 }
  0x1f   : > { %687 = vmatpush3.msra.mxu1 %v620_v16 }
  0x20   : > { %688 = vmatprep.subr.mxu1 %v619_v18 }
  0x21   : > { %689 = vmatpush3.msra.mxu1 %v619_v18 }
  0x22   : > { %690 = vmatprep.subr.mxu1 %v616_v19 }
  0x23   : > { %691 = vmatpush3.msra.mxu1 %v616_v19 }
  0x24   : > { %692 = vmatprep.subr.mxu1 %v615_v20 }
  0x25   : > { %693 = vmatpush3.msra.mxu1 %v615_v20 }
  0x26   : > { %694 = vmatprep.subr.mxu1 %v612_v22 }
  0x27   : > { %695 = vmatpush3.msra.mxu1 %v612_v22 }
  0x28   : > { %696 = vmatprep.subr.mxu1 %v611_v23 }
  0x29   : > { %697 = vmatpush3.msra.mxu1 %v611_v23 }
  0x2a   : > { %698 = vmatprep.subr.mxu1 %v608_v25 }
  0x2b   : > { %699 = vmatpush3.msra.mxu1 %v608_v25 }
  0x2c   : > { %700 = vmatprep.subr.mxu1 %v607_v26 }
  0x2d   : > { %701 = vmatpush3.msra.mxu1 %v607_v26 }
  0xd0   : > { %v345_v28 = vpop.f32.mrf.mxu0 }
  0xd1   : > { %v346_v29 = vadd.f32 %v594_v27, %v345_v28 }
  0xd2   : > { %v668_v30 = vpop.f32.mrf.mxu0 }
  0xd3   : > { %v352_v31 = vmax.f32 %v346_v29, 0.0 }
  0xd4   : > { %v348_v32 = vpop.f32.mrf.mxu0 }
  0xd5   : > { %v349_v33 = vadd.f32 %v594_v27, %v348_v32  ;;  %702 = vmatprep.mubr.f32.mxu1 %v352_v31 }
  0xd6   : > { %v669_v34 = vpop.f32.mrf.mxu0 }
  0xd7   : > { %v353_v35 = vmax.f32 %v349_v33, 0.0 }
  0xd9   : > { %703 = vmatmul.mubr.f32.vlgmr.msra.gmra.mxu1 %v353_v35 }
 0x199   : > { %v704_v37 = vpop.f32.mrf.mxu1 }
 0x19a   : > { %v465_v38 = vadd.f32 %v704_v37, %v598_v36 }
 0x19b   : > { %v459_v39 = vpop.f32.mrf.mxu1 }
 0x19c   : > { %v600_v40 = vmul.f32 -1.442695, %v465_v38  ;;  %v460_v41 = vadd.f32 %v598_v36, %v459_v39 }
 0x19e   : > { %717 = vpow2.f32 %v600_v40  ;;  %v599_v42 = vmul.f32 -1.442695, %v460_v41 }
 0x1a0   : > { %719 = vpow2.f32 %v599_v42 }
 0x1ab   : > { %v718_v43 = vpop.eup %717 }
 0x1ac   : > { %v475_v45 = vadd.f32 1.0, %v718_v43 }
 0x1ad   : > { %v720_v44 = vpop.eup %719 }
 0x1ae   : > { %v474_v46 = vadd.f32 1.0, %v720_v44 }
 0x1b0   : > { %721 = vrcp.f32 %v474_v46 }
 0x1b1   : > { %723 = vrcp.f32 %v475_v45 }
 0x1bd   : > { %v722_v47 = vpop.eup %721 }
 0x1be   : > { %v500_v49 = vmul.f32 %v722_v47, %v601_v48  ;;  %v480_v50 = vmul.f32 %v722_v47, %v722_v47  ;;  %v724_v51 = vpop.eup %723 }
 0x1bf   : > { %v501_v52 = vmul.f32 %v724_v51, %v601_v48  ;;  %v481_v53 = vmul.f32 %v724_v51, %v724_v51 }
 0x1c0   : > { %502 = vadd.xlane.f32.xlu1 %v500_v49  ;;  %482 = vadd.xlane.f32.xlu0 %v480_v50 }
 0x1c4   : > { %504 = vadd.xlane.f32.xlu1 %v501_v52  ;;  %484 = vadd.xlane.f32.xlu0 %v481_v53 }
 0x249   : > { %v503_v54 = vpop.xlane.xlu1 %502  ;;  %v483_v55 = vpop.xlane.xlu0 %482 }
 0x24d   : > { %v505_v56 = vpop.xlane.xlu1 %504  ;;  %v485_v57 = vpop.xlane.xlu0 %484 }
 0x24e   : > { %v506_v58 = vadd.f32 %v505_v56, %v503_v54  ;;  %v486_v59 = vmin.f32 %v483_v55, %v485_v57 }
 0x250   : > { %v507_v60 = vrot.slane %v506_v58, 4  ;;  %v487_v61 = vrot.slane %v486_v59, 4 }
 0x252   : > { %v508_v62 = vadd.f32 %v507_v60, %v506_v58  ;;  %v488_v63 = vmin.f32 %v486_v59, %v487_v61 }
 0x254   : > { %v509_v0 = vrot.slane %v508_v62, 2  ;;  %v489_v1 = vrot.slane %v488_v63, 2 }
 0x256   : > { %v510_v2 = vadd.f32 %v509_v0, %v508_v62  ;;  %v490_v3 = vmin.f32 %v488_v63, %v489_v1 }
 0x258   : > { %v511_v4 = vrot.slane %v510_v2, 1  ;;  %v491_v5 = vrot.slane %v490_v3, 1 }
 0x25a   : > { %v512_v6 = vadd.f32 %v511_v4, %v510_v2  ;;  %v492_v7 = vmin.f32 %v490_v3, %v491_v5 }
 0x25c   : > { %514 = vst [vmem:[%s283_s12] sm:$0x1] %v512_v6  ;;  %513 = vst [vmem:[%s280_s15] sm:$0x1] %v492_v7 }
 0x25d PF: > { %s18_s24 = sadd.s32 1, %s731_s24  }
 0x25e   : > { %p15_p4 = scmp.ge.s32.totalorder %s18_s24, 4  }
 0x260   :  { %17 = sbr.rel (!%p15_p4) target bundleno = 1 (0x1), region = 86 }

</bundles_post_ra>
